<compile_context>
chip_gen: v5e
topology: v5e:2x2
jax: 0.10.0
libtpu: 0.0.40
codegen_flags: <defaults>
</compile_context>

<pallas_src>
import math

import jax
import jax.numpy as jnp
from jax.experimental import pallas as pl
from jax.experimental.pallas import tpu as pltpu

D_IN, D_HID, D_OUT = 50, 160, 121
D_OUT_PAD = 128  # lane-dense output width (unmasked vst)


def _linres_kernel(x_ref,
                   w1_ref, b1_ref,
                   w2_ref, b2_ref,
                   w3_ref, b3_ref,
                   w4_ref, b4_ref,
                   w5_ref, b5_ref,
                   o_ref):
    # layer 1 + ReLU  (bf16 MXU matmul, f32 accumulate / epilogue)
    x = x_ref[...].astype(jnp.bfloat16)
    h = jnp.dot(x, w1_ref[...], preferred_element_type=jnp.float32) + b1_ref[...]
    h = jnp.maximum(h, 0.0)

    # layers 2-4: linear, add residual, ReLU
    for w_ref, b_ref in ((w2_ref, b2_ref), (w3_ref, b3_ref), (w4_ref, b4_ref)):
        t = jnp.dot(h.astype(jnp.bfloat16), w_ref[...],
                    preferred_element_type=jnp.float32) + b_ref[...]
        h = jnp.maximum(t + h, 0.0)

    # layer 5 + sigmoid (EUP exp + EUP approx reciprocal)
    y = jnp.dot(h.astype(jnp.bfloat16), w5_ref[...],
                preferred_element_type=jnp.float32) + b5_ref[...]
    o_ref[...] = pl.reciprocal(1.0 + jnp.exp(-y), approx=True).astype(o_ref.dtype)


def _round_up(n, m):
    return ((n + m - 1) // m) * m


def _default_tile_b(B):
    if B <= 512:
        # small batch: one big tile (still >= 8 rows for sublane alignment)
        return max(8, _round_up(B, 8))
    # large batch: big MXU-friendly tile, but keep >= 2 parallel grid steps
    # so v7x's 2 TensorCores both get work; cap at 1024 rows (VMEM headroom
    # even on v7x's 64 MiB).
    return min(1024, _round_up(pl.cdiv(B, 2), 8))


def linres_forward(x, params, *, tile_b=None, vmem_limit_bytes=48 * 1024 * 1024):
    """x: (B, 50) float32. params: dict of transposed weights/biases.
    Returns (B, 121) float32."""
    B = x.shape[0]
    if tile_b is None:
        tile_b = _default_tile_b(B)
    tile_b = max(8, _round_up(tile_b, 8))

    # Zero-pad the batch so every grid step gets a full tile (rows independent).
    B_pad = _round_up(B, tile_b)
    if B_pad != B:
        x = jnp.pad(x, ((0, B_pad - B), (0, 0)))

    # bf16 weights for the MXU; biases stay f32. Last layer lane-padded to 128.
    w = [params[f"w{i}"].astype(jnp.bfloat16) for i in range(1, 6)]
    b = [params[f"b{i}"].astype(jnp.float32) for i in range(1, 6)]
    w[4] = jnp.pad(w[4], ((0, 0), (0, D_OUT_PAD - D_OUT)))
    b[4] = jnp.pad(b[4], ((0, 0), (0, D_OUT_PAD - D_OUT)))

    def full_spec(shape):
        # whole array resident in VMEM; constant index_map => fetched once
        return pl.BlockSpec(shape, lambda i: (0,) * len(shape))

    grid = (B_pad // tile_b,)
    in_specs = [pl.BlockSpec((tile_b, D_IN), lambda i: (i, 0))]  # x tile
    for wi, bi in zip(w, b):
        in_specs += [full_spec(wi.shape), full_spec(bi.shape)]
    out_spec = pl.BlockSpec((tile_b, D_OUT_PAD), lambda i: (i, 0))

    out = pl.pallas_call(
        _linres_kernel,
        out_shape=jax.ShapeDtypeStruct((B_pad, D_OUT_PAD), jnp.float32),
        grid_spec=pltpu.PrefetchScalarGridSpec(
            num_scalar_prefetch=0,
            grid=grid,
            in_specs=in_specs,
            out_specs=out_spec,
        ),
        compiler_params=pltpu.CompilerParams(
            dimension_semantics=("parallel",),
            vmem_limit_bytes=vmem_limit_bytes),
    )(x, w[0], b[0], w[1], b[1], w[2], b[2], w[3], b[3], w[4], b[4])

    return out[:B, :D_OUT]


def init_params(key):
    """Deterministic init mimicking nn.Linear's U(-1/sqrt(fan_in), 1/sqrt(fan_in)).
    Weights are stored transposed: (in_features, out_features)."""
    dims = [(D_IN, D_HID), (D_HID, D_HID), (D_HID, D_HID), (D_HID, D_HID),
            (D_HID, D_OUT)]
    params = {}
    for idx, (fan_in, fan_out) in enumerate(dims, start=1):
        key, kw, kb = jax.random.split(key, 3)
        bound = 1.0 / math.sqrt(fan_in)
        params[f"w{idx}"] = jax.random.uniform(
            kw, (fan_in, fan_out), jnp.float32, -bound, bound)
        params[f"b{idx}"] = jax.random.uniform(
            kb, (1, fan_out), jnp.float32, -bound, bound)
    return params


def linres_ref_f32(x, params):
    """Pure-JAX f32 reference of the module forward pass."""
    h = jnp.maximum(x @ params["w1"] + params["b1"], 0.0)
    for i in (2, 3, 4):
        t = h @ params[f"w{i}"] + params[f"b{i}"]
        h = jnp.maximum(t + h, 0.0)
    return jax.nn.sigmoid(h @ params["w5"] + params["b5"])


def linres_ref_bf16(x, params):
    """Reference emulating the kernel's precision: bf16 matmul operands,
    f32 accumulation / bias / residual / activation."""
    def mm(a, w):
        return jnp.dot(a.astype(jnp.bfloat16).astype(jnp.float32),
                       w.astype(jnp.bfloat16).astype(jnp.float32),
                       preferred_element_type=jnp.float32)
    h = jnp.maximum(mm(x, params["w1"]) + params["b1"], 0.0)
    for i in (2, 3, 4):
        t = mm(h, params[f"w{i}"]) + params[f"b{i}"]
        h = jnp.maximum(t + h, 0.0)
    return jax.nn.sigmoid(mm(h, params["w5"]) + params["b5"])


if __name__ == "__main__":
    key = jax.random.PRNGKey(0)
    kx, kp = jax.random.split(key)

    B = 16
    x = jax.random.normal(kx, (B, D_IN), jnp.float32)
    params = init_params(kp)

    out = jax.block_until_ready(linres_forward(x, params))
    assert out.shape == (B, D_OUT), out.shape

    ref_bf16 = linres_ref_bf16(x, params)
    ref_f32 = linres_ref_f32(x, params)
    assert jnp.allclose(out, ref_bf16, atol=5e-3, rtol=5e-3), \
        float(jnp.max(jnp.abs(out - ref_bf16)))
    assert jnp.allclose(out, ref_f32, atol=3e-2, rtol=3e-2), \
        float(jnp.max(jnp.abs(out - ref_f32)))

    # Exercise the ragged-batch / multi-step-grid path (B not a multiple of tile_b).
    B2 = 37
    x2 = jax.random.normal(kx, (B2, D_IN), jnp.float32)
    out2 = jax.block_until_ready(linres_forward(x2, params, tile_b=16))
    assert out2.shape == (B2, D_OUT), out2.shape
    ref2 = linres_ref_bf16(x2, params)
    assert jnp.allclose(out2, ref2, atol=5e-3, rtol=5e-3), \
        float(jnp.max(jnp.abs(out2 - ref2)))

    print("KERNEL_OK")
</pallas_src>

<mosaic_0001>
module attributes {stable_mosaic.version = 11 : i64} {
  func.func @_linres_kernel(%arg0: i32, %arg1: memref<16x50xf32, #tpu.memory_space<vmem>>, %arg2: memref<50x160xbf16, #tpu.memory_space<vmem>>, %arg3: memref<1x160xf32, #tpu.memory_space<vmem>>, %arg4: memref<160x160xbf16, #tpu.memory_space<vmem>>, %arg5: memref<1x160xf32, #tpu.memory_space<vmem>>, %arg6: memref<160x160xbf16, #tpu.memory_space<vmem>>, %arg7: memref<1x160xf32, #tpu.memory_space<vmem>>, %arg8: memref<160x160xbf16, #tpu.memory_space<vmem>>, %arg9: memref<1x160xf32, #tpu.memory_space<vmem>>, %arg10: memref<160x128xbf16, #tpu.memory_space<vmem>>, %arg11: memref<1x128xf32, #tpu.memory_space<vmem>>, %arg12: memref<16x128xf32, #tpu.memory_space<vmem>>) attributes {dimension_semantics = [#tpu.dimension_semantics<parallel>], iteration_bounds = array<i64: 1>, scalar_prefetch = 0 : i64, scratch_operands = 0 : i64, tpu.core_type = #tpu.core_type<tc>, window_params = [{transform_indices = @transform_0, window_bounds = array<i64: 16, 50>}, {pipeline_mode = #tpu.pipeline_mode<synchronous>, transform_indices = @transform_1, window_bounds = array<i64: 50, 160>}, {pipeline_mode = #tpu.pipeline_mode<synchronous>, transform_indices = @transform_2, window_bounds = array<i64: 1, 160>}, {pipeline_mode = #tpu.pipeline_mode<synchronous>, transform_indices = @transform_3, window_bounds = array<i64: 160, 160>}, {pipeline_mode = #tpu.pipeline_mode<synchronous>, transform_indices = @transform_4, window_bounds = array<i64: 1, 160>}, {pipeline_mode = #tpu.pipeline_mode<synchronous>, transform_indices = @transform_5, window_bounds = array<i64: 160, 160>}, {pipeline_mode = #tpu.pipeline_mode<synchronous>, transform_indices = @transform_6, window_bounds = array<i64: 1, 160>}, {pipeline_mode = #tpu.pipeline_mode<synchronous>, transform_indices = @transform_7, window_bounds = array<i64: 160, 160>}, {pipeline_mode = #tpu.pipeline_mode<synchronous>, transform_indices = @transform_8, window_bounds = array<i64: 1, 160>}, {pipeline_mode = #tpu.pipeline_mode<synchronous>, transform_indices = @transform_9, window_bounds = array<i64: 160, 128>}, {pipeline_mode = #tpu.pipeline_mode<synchronous>, transform_indices = @transform_10, window_bounds = array<i64: 1, 128>}, {transform_indices = @transform_11, window_bounds = array<i64: 16, 128>}]} {
    %c0 = arith.constant 0 : index
    %c0_0 = arith.constant 0 : index
    %0 = vector.load %arg1[%c0, %c0_0] : memref<16x50xf32, #tpu.memory_space<vmem>>, vector<16x50xf32>
    %1 = arith.truncf %0 : vector<16x50xf32> to vector<16x50xbf16>
    %c0_1 = arith.constant 0 : index
    %c0_2 = arith.constant 0 : index
    %2 = vector.load %arg2[%c0_1, %c0_2] : memref<50x160xbf16, #tpu.memory_space<vmem>>, vector<50x160xbf16>
    %cst = arith.constant dense<0.000000e+00> : vector<16x160xf32>
    %3 = tpu.matmul %1, %2, %cst {dimension_numbers = #tpu.dot_dimension_numbers<[1], [0], [0], [1], [0, 0, 1, 1], [], []>} : vector<16x50xbf16>, vector<50x160xbf16>, vector<16x160xf32> -> vector<16x160xf32>
    %c0_3 = arith.constant 0 : index
    %c0_4 = arith.constant 0 : index
    %4 = vector.load %arg3[%c0_3, %c0_4] : memref<1x160xf32, #tpu.memory_space<vmem>>, vector<1x160xf32>
    %5 = vector.broadcast %4 : vector<1x160xf32> to vector<16x160xf32>
    %6 = arith.addf %3, %5 : vector<16x160xf32>
    %cst_5 = arith.constant 0.000000e+00 : f32
    %7 = vector.broadcast %cst_5 : f32 to vector<16x160xf32>
    %8 = arith.maximumf %6, %7 : vector<16x160xf32>
    %9 = arith.truncf %8 : vector<16x160xf32> to vector<16x160xbf16>
    %c0_6 = arith.constant 0 : index
    %c0_7 = arith.constant 0 : index
    %10 = vector.load %arg4[%c0_6, %c0_7] : memref<160x160xbf16, #tpu.memory_space<vmem>>, vector<160x160xbf16>
    %cst_8 = arith.constant dense<0.000000e+00> : vector<16x160xf32>
    %11 = tpu.matmul %9, %10, %cst_8 {dimension_numbers = #tpu.dot_dimension_numbers<[1], [0], [0], [1], [0, 0, 1, 1], [], []>} : vector<16x160xbf16>, vector<160x160xbf16>, vector<16x160xf32> -> vector<16x160xf32>
    %c0_9 = arith.constant 0 : index
    %c0_10 = arith.constant 0 : index
    %12 = vector.load %arg5[%c0_9, %c0_10] : memref<1x160xf32, #tpu.memory_space<vmem>>, vector<1x160xf32>
    %13 = vector.broadcast %12 : vector<1x160xf32> to vector<16x160xf32>
    %14 = arith.addf %11, %13 : vector<16x160xf32>
    %15 = arith.addf %14, %8 : vector<16x160xf32>
    %cst_11 = arith.constant 0.000000e+00 : f32
    %16 = vector.broadcast %cst_11 : f32 to vector<16x160xf32>
    %17 = arith.maximumf %15, %16 : vector<16x160xf32>
    %18 = arith.truncf %17 : vector<16x160xf32> to vector<16x160xbf16>
    %c0_12 = arith.constant 0 : index
    %c0_13 = arith.constant 0 : index
    %19 = vector.load %arg6[%c0_12, %c0_13] : memref<160x160xbf16, #tpu.memory_space<vmem>>, vector<160x160xbf16>
    %cst_14 = arith.constant dense<0.000000e+00> : vector<16x160xf32>
    %20 = tpu.matmul %18, %19, %cst_14 {dimension_numbers = #tpu.dot_dimension_numbers<[1], [0], [0], [1], [0, 0, 1, 1], [], []>} : vector<16x160xbf16>, vector<160x160xbf16>, vector<16x160xf32> -> vector<16x160xf32>
    %c0_15 = arith.constant 0 : index
    %c0_16 = arith.constant 0 : index
    %21 = vector.load %arg7[%c0_15, %c0_16] : memref<1x160xf32, #tpu.memory_space<vmem>>, vector<1x160xf32>
    %22 = vector.broadcast %21 : vector<1x160xf32> to vector<16x160xf32>
    %23 = arith.addf %20, %22 : vector<16x160xf32>
    %24 = arith.addf %23, %17 : vector<16x160xf32>
    %cst_17 = arith.constant 0.000000e+00 : f32
    %25 = vector.broadcast %cst_17 : f32 to vector<16x160xf32>
    %26 = arith.maximumf %24, %25 : vector<16x160xf32>
    %27 = arith.truncf %26 : vector<16x160xf32> to vector<16x160xbf16>
    %c0_18 = arith.constant 0 : index
    %c0_19 = arith.constant 0 : index
    %28 = vector.load %arg8[%c0_18, %c0_19] : memref<160x160xbf16, #tpu.memory_space<vmem>>, vector<160x160xbf16>
    %cst_20 = arith.constant dense<0.000000e+00> : vector<16x160xf32>
    %29 = tpu.matmul %27, %28, %cst_20 {dimension_numbers = #tpu.dot_dimension_numbers<[1], [0], [0], [1], [0, 0, 1, 1], [], []>} : vector<16x160xbf16>, vector<160x160xbf16>, vector<16x160xf32> -> vector<16x160xf32>
    %c0_21 = arith.constant 0 : index
    %c0_22 = arith.constant 0 : index
    %30 = vector.load %arg9[%c0_21, %c0_22] : memref<1x160xf32, #tpu.memory_space<vmem>>, vector<1x160xf32>
    %31 = vector.broadcast %30 : vector<1x160xf32> to vector<16x160xf32>
    %32 = arith.addf %29, %31 : vector<16x160xf32>
    %33 = arith.addf %32, %26 : vector<16x160xf32>
    %cst_23 = arith.constant 0.000000e+00 : f32
    %34 = vector.broadcast %cst_23 : f32 to vector<16x160xf32>
    %35 = arith.maximumf %33, %34 : vector<16x160xf32>
    %36 = arith.truncf %35 : vector<16x160xf32> to vector<16x160xbf16>
    %c0_24 = arith.constant 0 : index
    %c0_25 = arith.constant 0 : index
    %37 = vector.load %arg10[%c0_24, %c0_25] : memref<160x128xbf16, #tpu.memory_space<vmem>>, vector<160x128xbf16>
    %cst_26 = arith.constant dense<0.000000e+00> : vector<16x128xf32>
    %38 = tpu.matmul %36, %37, %cst_26 {dimension_numbers = #tpu.dot_dimension_numbers<[1], [0], [0], [1], [0, 0, 1, 1], [], []>} : vector<16x160xbf16>, vector<160x128xbf16>, vector<16x128xf32> -> vector<16x128xf32>
    %c0_27 = arith.constant 0 : index
    %c0_28 = arith.constant 0 : index
    %39 = vector.load %arg11[%c0_27, %c0_28] : memref<1x128xf32, #tpu.memory_space<vmem>>, vector<1x128xf32>
    %40 = vector.broadcast %39 : vector<1x128xf32> to vector<16x128xf32>
    %41 = arith.addf %38, %40 : vector<16x128xf32>
    %cst_29 = arith.constant 0.000000e+00 : f32
    %42 = vector.broadcast %cst_29 : f32 to vector<16x128xf32>
    %43 = arith.subf %42, %41 : vector<16x128xf32>
    %44 = math.exp %43 : vector<16x128xf32>
    %cst_30 = arith.constant 1.000000e+00 : f32
    %45 = vector.broadcast %cst_30 : f32 to vector<16x128xf32>
    %46 = arith.addf %45, %44 : vector<16x128xf32>
    %47 = tpu.reciprocal %46 {approx = true} : vector<16x128xf32> -> vector<16x128xf32>
    %c0_31 = arith.constant 0 : index
    %c0_32 = arith.constant 0 : index
    %48 = vector.load %arg12[%c0_31, %c0_32] : memref<16x128xf32, #tpu.memory_space<vmem>>, vector<16x128xf32>
    tpu.vector_store %arg12[%c0_31, %c0_32], %47 {strides = array<i32>} : memref<16x128xf32, #tpu.memory_space<vmem>>, vector<16x128xf32>,
    return
  }
  func.func @transform_0(%arg0: i32) -> (i32, i32) {
    %c0_i32 = arith.constant 0 : i32
    %c0_i32_0 = arith.constant 0 : i32
    return %arg0, %c0_i32 : i32, i32
  }
  func.func @transform_1(%arg0: i32) -> (i32, i32) {
    %c0_i32 = arith.constant 0 : i32
    %c0_i32_0 = arith.constant 0 : i32
    %c0_i32_1 = arith.constant 0 : i32
    return %c0_i32, %c0_i32_0 : i32, i32
  }
  func.func @transform_2(%arg0: i32) -> (i32, i32) {
    %c0_i32 = arith.constant 0 : i32
    %c0_i32_0 = arith.constant 0 : i32
    %c0_i32_1 = arith.constant 0 : i32
    return %c0_i32, %c0_i32_0 : i32, i32
  }
  func.func @transform_3(%arg0: i32) -> (i32, i32) {
    %c0_i32 = arith.constant 0 : i32
    %c0_i32_0 = arith.constant 0 : i32
    %c0_i32_1 = arith.constant 0 : i32
    return %c0_i32, %c0_i32_0 : i32, i32
  }
  func.func @transform_4(%arg0: i32) -> (i32, i32) {
    %c0_i32 = arith.constant 0 : i32
    %c0_i32_0 = arith.constant 0 : i32
    %c0_i32_1 = arith.constant 0 : i32
    return %c0_i32, %c0_i32_0 : i32, i32
  }
  func.func @transform_5(%arg0: i32) -> (i32, i32) {
    %c0_i32 = arith.constant 0 : i32
    %c0_i32_0 = arith.constant 0 : i32
    %c0_i32_1 = arith.constant 0 : i32
    return %c0_i32, %c0_i32_0 : i32, i32
  }
  func.func @transform_6(%arg0: i32) -> (i32, i32) {
    %c0_i32 = arith.constant 0 : i32
    %c0_i32_0 = arith.constant 0 : i32
    %c0_i32_1 = arith.constant 0 : i32
    return %c0_i32, %c0_i32_0 : i32, i32
  }
  func.func @transform_7(%arg0: i32) -> (i32, i32) {
    %c0_i32 = arith.constant 0 : i32
    %c0_i32_0 = arith.constant 0 : i32
    %c0_i32_1 = arith.constant 0 : i32
    return %c0_i32, %c0_i32_0 : i32, i32
  }
  func.func @transform_8(%arg0: i32) -> (i32, i32) {
    %c0_i32 = arith.constant 0 : i32
    %c0_i32_0 = arith.constant 0 : i32
    %c0_i32_1 = arith.constant 0 : i32
    return %c0_i32, %c0_i32_0 : i32, i32
  }
  func.func @transform_9(%arg0: i32) -> (i32, i32) {
    %c0_i32 = arith.constant 0 : i32
    %c0_i32_0 = arith.constant 0 : i32
    %c0_i32_1 = arith.constant 0 : i32
    return %c0_i32, %c0_i32_0 : i32, i32
  }
  func.func @transform_10(%arg0: i32) -> (i32, i32) {
    %c0_i32 = arith.constant 0 : i32
    %c0_i32_0 = arith.constant 0 : i32
    %c0_i32_1 = arith.constant 0 : i32
    return %c0_i32, %c0_i32_0 : i32, i32
  }
  func.func @transform_11(%arg0: i32) -> (i32, i32) {
    %c0_i32 = arith.constant 0 : i32
    %c0_i32_0 = arith.constant 0 : i32
    return %arg0, %c0_i32 : i32, i32
  }
}

</mosaic_0001>

<bundles_post_ra>
// kernel: tpu_custom_call.1
= control target key start
LH: loop header
LB: loop body
LE: loop exit
PB: predicated region body
PF: predicated region fallthrough
CT: control target
= control target key end

     0   :  { %16 = vsyncpa [#allocation3], 0  ;;  %s1779_s0 = inlined_call_operand.hbm [shape: f32[16,50], index: 0, kind: input, shape index: {}]   ;;  %s1780_s1 = inlined_call_operand.hbm [shape: bf16[50,160], index: 1, kind: input, shape index: {}]   ;;  %s1781_s2 = inlined_call_operand.hbm [shape: f32[1,160], index: 2, kind: input, shape index: {}]   ;;  %s1782_s3 = inlined_call_operand.hbm [shape: bf16[160,160], index: 3, kind: input, shape index: {}]   ;;  %s1783_s4 = inlined_call_operand.vmem [shape: f32[1,160], index: 4, kind: input, shape index: {}]   ;;  %s1784_s5 = inlined_call_operand.hbm [shape: bf16[160,160], index: 5, kind: input, shape index: {}]   ;;  %s1785_s6 = inlined_call_operand.vmem [shape: f32[1,160], index: 6, kind: input, shape index: {}]   ;;  %s1786_s7 = inlined_call_operand.hbm [shape: bf16[160,160], index: 7, kind: input, shape index: {}]   ;;  %s1787_s8 = inlined_call_operand.vmem [shape: f32[1,160], index: 8, kind: input, shape index: {}]   ;;  %s1788_s9 = inlined_call_operand.hbm [shape: bf16[160,128], index: 9, kind: input, shape index: {}]   ;;  %s1789_s10 = inlined_call_operand.vmem [shape: f32[1,128], index: 10, kind: input, shape index: {}]   ;;  %s1790_s11 = inlined_call_operand.hbm [shape: f32[16,128], index: 11, kind: output, shape index: {}]  }
   0x1   :  { %17 = vsyncpa [#allocation6], 0 }
   0x2   :  { %18 = vsyncpa [#allocation9], 0 }
   0x3   :  { %19 = vsyncpa [#allocation12], 0 }
   0x4   :  { %20 = vsyncpa [#allocation4], 0  ;;  %s38_s19 = sshll.u32 %s1780_s1, 4  ;;  %s1590_s20 = smov [#allocation5]   ;;  %s39_s19 = int_to_ptr.hbm [resolvable:$true] %s38_s19 }
   0x5   :  { %s40_s21 = sshll.u32 %s1590_s20, 4  ;;  %s62_s24 = sshll.u32 %s1782_s3, 4  ;;  %s41_s21 = int_to_ptr.vmem [resolvable:$true] %s40_s21  ;;  %s63_s24 = int_to_ptr.hbm [resolvable:$true] %s62_s24 }
   0x6   :  { %s1591_s25 = smov 128   ;;  %s1592_s26 = smov 8  }
   0x7   :  { %46 = dma.hbm_to_vmem [thread:$0]  %s39_s19, 896, %s41_s21, [#allocation6], %s1591_s25, %s1591_s25, %s1592_s26  }
   0x8   :  { %s1593_s27 = smov [#allocation8]   ;;  %s92_s1 = sshll.u32 %s1786_s7, 4  ;;  %s93_s1 = int_to_ptr.hbm [resolvable:$true] %s92_s1 }
   0x9   :  { %s64_s28 = sshll.u32 %s1593_s27, 4  ;;  %s25_s13 = sshll.u32 %s1779_s0, 4  ;;  %s65_s28 = int_to_ptr.vmem [resolvable:$true] %s64_s28  ;;  %s26_s13 = int_to_ptr.hbm [resolvable:$true] %s25_s13 }
   0xa   :  { %70 = dma.hbm_to_vmem [thread:$0]  %s63_s24, 2560, %s65_s28, [#allocation9], %s1591_s25, %s1591_s25, %s1592_s26  }
   0xb   :  { %s1594_s14 = smov [#allocation11]   ;;  %s1595_s16 = smov [#allocation2]  }
   0xc   :  { %s94_s15 = sshll.u32 %s1594_s14, 4  ;;  %s27_s7 = sshll.u32 %s1595_s16, 4  ;;  %s95_s15 = int_to_ptr.vmem [resolvable:$true] %s94_s15  ;;  %s28_s7 = int_to_ptr.vmem [resolvable:$true] %s27_s7 }
   0xd   :  { %100 = dma.hbm_to_vmem [thread:$0]  %s93_s1, 2560, %s95_s15, [#allocation12], %s1591_s25, %s1591_s25, %s1592_s26  }
   0xe   :  { %s52_s19 = sshll.u32 %s1781_s2, 4  ;;  %s77_s21 = sshll.u32 %s1784_s5, 4  ;;  %s53_s19 = int_to_ptr.hbm [resolvable:$true] %s52_s19  ;;  %s78_s21 = int_to_ptr.hbm [resolvable:$true] %s77_s21 }
   0xf   :  { %33 = dma.hbm_to_vmem [thread:$0]  %s26_s13, 256, %s28_s7, [#allocation3], %s1591_s25, %s1591_s25, %s1592_s26  }
  0x10   :  { %s1596_s22 = smov [#allocation7]   ;;  %s1597_s24 = smov [#allocation10]  }
  0x11   :  { %s54_s23 = sshll.u32 %s1596_s22, 4  ;;  %s79_s27 = sshll.u32 %s1597_s24, 4  ;;  %s55_s23 = int_to_ptr.vmem [resolvable:$true] %s54_s23  ;;  %s80_s27 = int_to_ptr.vmem [resolvable:$true] %s79_s27 }
  0x12   :  { %57 = dma.hbm_to_vmem [thread:$0]  %s53_s19, 32, %s55_s23, [#allocation6]  }
  0x13   :  { %s107_s2 = sshll.u32 %s1788_s9, 4  ;;  %s1598_s30 = smov [#allocation13]   ;;  %s108_s2 = int_to_ptr.hbm [resolvable:$true] %s107_s2 }
  0x14   :  { %85 = dma.hbm_to_vmem [thread:$0]  %s78_s21, 2560, %s80_s27, [#allocation9], %s1591_s25, %s1591_s25, %s1592_s26  }
  0x15   :  { %s109_s1 = sshll.u32 %s1598_s30, 4  ;;  %s1599_s5 = smov 64   ;;  %s110_s1 = int_to_ptr.vmem [resolvable:$true] %s109_s1 }
  0x16   :  { %s1600_s3 = smov 4  }
  0x17   :  { %115 = dma.hbm_to_vmem [thread:$0]  %s108_s2, 1280, %s110_s1, [#allocation12], %s1599_s5, %s1599_s5, %s1600_s3  }
  0x18   :  { %1580 = dma.done.wait [#allocation3], 256  }
  0x19   :  { %1581 = vsyncadd [#allocation3], 4294967040 }
  0x1a   :  { %1582 = dma.done.wait [#allocation6], 928  }
  0x1b   :  { %1583 = vsyncadd [#allocation6], 4294966368 }
  0x1c   :  { %1584 = dma.done.wait [#allocation9], 5120  }
  0x1d   :  { %1585 = vsyncadd [#allocation9], 4294962176 }
  0x1e   :  { %1586 = dma.done.wait [#allocation12], 3840  }
  0x1f   :  { %1587 = vsyncadd [#allocation12], 4294963456  ;;  %v156_v0 = vld [vmem:[#allocation5 + $0x30] sm:$0x11]  ;;  %vm202_vm0 = vcmask 1040384   ;;  %v148_v43 = vld [vmem:[#allocation2 + $0x8] sm:$0xff] }
  0x20   :  { %v182_v1 = vunpack.c.l.b16 %v156_v0  ;;  %v183_v2 = vunpack.c.h.b16 %v156_v0  ;;  %v996_v3 = vld [vmem:[#allocation5 + $0x20] sm:$0xf]  ;;  %v1296_v6 = vld [vmem:[#allocation5 + $0x24] sm:$0xf0]  ;;  %v1295_v7 = vld [vmem:[#allocation5 + $0x24] sm:$0xf] }
  0x21   :  { %v998_v8 = vld [vmem:[#allocation5 + $0x28] sm:$0xf0]  ;;  %v988_v11 = vld [vmem:[#allocation5 + $0x10] sm:$0xf]  ;;  %v1294_v12 = vld [vmem:[#allocation5 + $0x14] sm:$0xf0]  ;;  %v997_v15 = vor.u32 %v1296_v6, %v996_v3 }
  0x22   :  { %v190_v4 = vpack.c.b16 %v182_v1, %v182_v1  ;;  %v191_v5 = vpack.c.b16 %v183_v2, %v183_v2  ;;  %v1062_v13 = vld [vmem:[#allocation8 + $0x70] sm:$0xf]  ;;  %v1312_v14 = vld [vmem:[#allocation8 + $0x74] sm:$0xf0]  ;;  %v1001_v16 = vor.u32 %v1295_v7, %v998_v8  ;;  %v1054_v19 = vld [vmem:[#allocation8 + $0x60] sm:$0xf]  ;;  %v989_v30 = vor.u32 %v1294_v12, %v988_v11 }
  0x23   :  { %v1293_v17 = vld [vmem:[#allocation5 + $0x14] sm:$0xf]  ;;  %v1063_v18 = vor.u32 %v1312_v14, %v1062_v13  ;;  %v1310_v20 = vld [vmem:[#allocation8 + $0x64] sm:$0xf0]  ;;  %v990_v21 = vld [vmem:[#allocation5 + $0x18] sm:$0xf0] }
  0x24   :  { %v204_v9 = vsel %vm202_vm0, %v190_v4, 0  ;;  %v207_v10 = vsel %vm202_vm0, %v191_v5, 0  ;;  %v1078_v22 = vld [vmem:[#allocation8 + $0x90] sm:$0xf]  ;;  %v1316_v23 = vld [vmem:[#allocation8 + $0x94] sm:$0xf0]  ;;  %v1055_v24 = vor.u32 %v1310_v20, %v1054_v19  ;;  %v993_v31 = vor.u32 %v1293_v17, %v990_v21 }
  0x25   :  { %213 = vmatpush.bf16.msra.mxu0 %v204_v9  ;;  %227 = vmatpush.bf16.msra.mxu1 %v207_v10  ;;  %v1046_v25 = vld [vmem:[#allocation8 + $0x50] sm:$0xf]  ;;  %v1079_v26 = vor.u32 %v1316_v23, %v1078_v22  ;;  %v1070_v27 = vld [vmem:[#allocation8 + $0x80] sm:$0xf]  ;;  %v1308_v28 = vld [vmem:[#allocation8 + $0x54] sm:$0xf0] }
  0x26   :  { %373 = vmatpush.bf16.msra.mxu2 %v1063_v18  ;;  %v1314_v29 = vld [vmem:[#allocation8 + $0x84] sm:$0xf0]  ;;  %v1292_v33 = vld [vmem:[#allocation5 + $0x4] sm:$0xf0]  ;;  %v982_v35 = vld [vmem:[#allocation5 + $0x8] sm:$0xf0]  ;;  %v1047_v37 = vor.u32 %v1308_v28, %v1046_v25 }
  0x27   :  { %v980_v32 = vld [vmem:[#allocation5] sm:$0xf]  ;;  %v1291_v34 = vld [vmem:[#allocation5 + $0x4] sm:$0xf]  ;;  %393 = vmatpush.bf16.msra.mxu3 %v1079_v26  ;;  %v1071_v36 = vor.u32 %v1314_v29, %v1070_v27  ;;  %v1038_v38 = vld [vmem:[#allocation8 + $0x40] sm:$0xf] }
  0x28   :  { %v1306_v39 = vld [vmem:[#allocation8 + $0x44] sm:$0xf0]  ;;  %v981_v40 = vor.u32 %v1292_v33, %v980_v32  ;;  %v985_v41 = vor.u32 %v1291_v34, %v982_v35  ;;  %v147_v42 = vld [vmem:[#allocation2] sm:$0xff]  ;;  %vm198_vm1 = vcmask 408576   ;;  %v1030_v46 = vld [vmem:[#allocation8 + $0x30] sm:$0xf] }
  0x29   :  { %214 = vmatpush.bf16.msra.mxu0 %v997_v15  ;;  %228 = vmatpush.bf16.msra.mxu1 %v1001_v16  ;;  %v1039_v44 = vor.u32 %v1306_v39, %v1038_v38  ;;  %v149_v45 = vpack.c.bf16 %v148_v43, %v147_v42  ;;  %v1304_v47 = vld [vmem:[#allocation8 + $0x34] sm:$0xf0]  ;;  %v1311_v48 = vld [vmem:[#allocation8 + $0x74] sm:$0xf]  ;;  %v1064_v50 = vld [vmem:[#allocation8 + $0x78] sm:$0xf0] }
  0x2a   :  { %374 = vmatpush.bf16.msra.mxu2 %v1055_v24  ;;  %v1031_v49 = vor.u32 %v1304_v47, %v1030_v46  ;;  %v1067_v51 = vor.u32 %v1311_v48, %v1064_v50  ;;  %v1022_v52 = vld [vmem:[#allocation8 + $0x20] sm:$0xf]  ;;  %v1302_v53 = vld [vmem:[#allocation8 + $0x24] sm:$0xf0]  ;;  %v1309_v54 = vld [vmem:[#allocation8 + $0x64] sm:$0xf] }
  0x2b   :  { %394 = vmatpush.bf16.msra.mxu3 %v1071_v36  ;;  %v1023_v55 = vor.u32 %v1302_v53, %v1022_v52  ;;  %v1056_v56 = vld [vmem:[#allocation8 + $0x68] sm:$0xf0]  ;;  %v1014_v58 = vld [vmem:[#allocation8 + $0x10] sm:$0xf]  ;;  %v1300_v59 = vld [vmem:[#allocation8 + $0x14] sm:$0xf0] }
  0x2c   :  { %v1059_v57 = vor.u32 %v1309_v54, %v1056_v56  ;;  %v1307_v60 = vld [vmem:[#allocation8 + $0x54] sm:$0xf]  ;;  %v1015_v61 = vor.u32 %v1300_v59, %v1014_v58  ;;  %v1048_v62 = vld [vmem:[#allocation8 + $0x58] sm:$0xf0]  ;;  %v1006_v3 = vld [vmem:[#allocation8] sm:$0xf] }
  0x2d   :  { %215 = vmatpush.bf16.msra.mxu0 %v989_v30  ;;  %229 = vmatpush.bf16.msra.mxu1 %v993_v31  ;;  %v1315_v63 = vld [vmem:[#allocation8 + $0x94] sm:$0xf]  ;;  %v1080_v0 = vld [vmem:[#allocation8 + $0x98] sm:$0xf0]  ;;  %v1051_v1 = vor.u32 %v1307_v60, %v1048_v62  ;;  %v1298_v4 = vld [vmem:[#allocation8 + $0x4] sm:$0xf0] }
  0x2e   :  { %375 = vmatpush.bf16.msra.mxu2 %v1047_v37  ;;  %v1083_v2 = vor.u32 %v1315_v63, %v1080_v0  ;;  %v1305_v5 = vld [vmem:[#allocation8 + $0x44] sm:$0xf]  ;;  %v1007_v6 = vor.u32 %v1298_v4, %v1006_v3  ;;  %v1040_v7 = vld [vmem:[#allocation8 + $0x48] sm:$0xf0]  ;;  %v1303_v12 = vld [vmem:[#allocation8 + $0x34] sm:$0xf] }
  0x2f   :  { %401 = vmatpush.bf16.msrb.mxu3 %v1067_v51  ;;  %v1313_v8 = vld [vmem:[#allocation8 + $0x84] sm:$0xf]  ;;  %v1072_v9 = vld [vmem:[#allocation8 + $0x88] sm:$0xf0]  ;;  %v1043_v10 = vor.u32 %v1305_v5, %v1040_v7  ;;  %v1032_v13 = vld [vmem:[#allocation8 + $0x38] sm:$0xf0] }
  0x30   :  { %v1075_v11 = vor.u32 %v1313_v8, %v1072_v9  ;;  %v1035_v14 = vor.u32 %v1303_v12, %v1032_v13  ;;  %v1301_v15 = vld [vmem:[#allocation8 + $0x24] sm:$0xf]  ;;  %v1024_v16 = vld [vmem:[#allocation8 + $0x28] sm:$0xf0]  ;;  %v1299_v18 = vld [vmem:[#allocation8 + $0x14] sm:$0xf] }
  0x31   :  { %216 = vmatpush.bf16.msra.mxu0 %v981_v40  ;;  %230 = vmatpush.bf16.msra.mxu1 %v985_v41  ;;  %v1027_v17 = vor.u32 %v1301_v15, %v1024_v16  ;;  %v1016_v19 = vld [vmem:[#allocation8 + $0x18] sm:$0xf0]  ;;  %v1297_v21 = vld [vmem:[#allocation8 + $0x4] sm:$0xf]  ;;  %v1008_v22 = vld [vmem:[#allocation8 + $0x8] sm:$0xf0] }
  0x32   :  { %376 = vmatpush.bf16.msra.mxu2 %v1039_v44  ;;  %v1019_v20 = vor.u32 %v1299_v18, %v1016_v19  ;;  %v1011_v23 = vor.u32 %v1297_v21, %v1008_v22  ;;  %v157_v24 = vld [vmem:[#allocation7] sm:$0x3]  ;;  %v1144_v25 = vld [vmem:[#allocation10 + $0x70] sm:$0xf]  ;;  %v1332_v26 = vld [vmem:[#allocation10 + $0x74] sm:$0xf0] }
  0x33   :  { %402 = vmatpush.bf16.msrb.mxu3 %v1059_v57  ;;  %v1331_v27 = vld [vmem:[#allocation10 + $0x74] sm:$0xf]  ;;  %v1145_v30 = vor.u32 %v1332_v26, %v1144_v25  ;;  %v1146_v31 = vld [vmem:[#allocation10 + $0x78] sm:$0xf0]  ;;  %v1136_v32 = vld [vmem:[#allocation10 + $0x60] sm:$0xf] }
  0x34   :  { %1002 = vmatmul.msk.bf16.vlgmr.msra.gmra.mxu0 %vm198_vm1, %v149_v45  ;;  %1003 = vmatmul.msk.bf16.vlgmr.msra.gmra.mxu1 %vm198_vm1, %v149_v45  ;;  %v1330_v33 = vld [vmem:[#allocation10 + $0x64] sm:$0xf0]  ;;  %v159_v34 = vperm.slane %v157_v24, 0  ;;  %v1149_v35 = vor.u32 %v1331_v27, %v1146_v31  ;;  %v1329_v36 = vld [vmem:[#allocation10 + $0x64] sm:$0xf]  ;;  %v160_v39 = vperm.slane %v157_v24, 1 }
  0x35   :  { %421 = vmatpush.bf16.msrb.mxu0 %v1083_v2  ;;  %v1138_v37 = vld [vmem:[#allocation10 + $0x68] sm:$0xf0]  ;;  %568 = vmatpush.bf16.msrb.mxu1 %v1145_v30  ;;  %v1137_v38 = vor.u32 %v1330_v33, %v1136_v32  ;;  %vm369_vm2 = vcmask 261120   ;;  %v1128_v53 = vld [vmem:[#allocation10 + $0x50] sm:$0xf]  ;;  %s962_s18 = sshll.u32 %s1790_s11, 4  ;;  %s963_s18 = int_to_ptr.hbm [resolvable:$true] %s962_s18 }
  0x36   :  { %377 = vmatpush.bf16.msra.mxu2 %v1031_v49  ;;  %v1141_v40 = vor.u32 %v1329_v36, %v1138_v37  ;;  %v1328_v54 = vld [vmem:[#allocation10 + $0x54] sm:$0xf0]  ;;  %v1130_v57 = vld [vmem:[#allocation10 + $0x58] sm:$0xf0]  ;;  %v1120_v59 = vld [vmem:[#allocation10 + $0x40] sm:$0xf] }
  0x37   :  { %403 = vmatpush.bf16.msrb.mxu3 %v1051_v1  ;;  %v1129_v56 = vor.u32 %v1328_v54, %v1128_v53  ;;  %v1326_v60 = vld [vmem:[#allocation10 + $0x44] sm:$0xf0]  ;;  %v1122_v63 = vld [vmem:[#allocation10 + $0x48] sm:$0xf0]  ;;  %v1112_v1 = vld [vmem:[#allocation10 + $0x30] sm:$0xf] }
  0x38   :  { %v1121_v62 = vor.u32 %v1326_v60, %v1120_v59  ;;  %v1324_v2 = vld [vmem:[#allocation10 + $0x34] sm:$0xf0]  ;;  %v1323_v3 = vld [vmem:[#allocation10 + $0x34] sm:$0xf]  ;;  %v1114_v5 = vld [vmem:[#allocation10 + $0x38] sm:$0xf0] }
  0x39   :  { %422 = vmatpush.bf16.msrb.mxu0 %v1075_v11  ;;  %569 = vmatpush.bf16.msrb.mxu1 %v1137_v38  ;;  %v1113_v4 = vor.u32 %v1324_v2, %v1112_v1  ;;  %v1104_v7 = vld [vmem:[#allocation10 + $0x20] sm:$0xf]  ;;  %v1322_v8 = vld [vmem:[#allocation10 + $0x24] sm:$0xf0]  ;;  %v1321_v9 = vld [vmem:[#allocation10 + $0x24] sm:$0xf] }
  0x3a   :  { %378 = vmatpush.bf16.msra.mxu2 %v1023_v55  ;;  %v1327_v55 = vld [vmem:[#allocation10 + $0x54] sm:$0xf]  ;;  %v1106_v11 = vld [vmem:[#allocation10 + $0x28] sm:$0xf0]  ;;  %v1096_v13 = vld [vmem:[#allocation10 + $0x10] sm:$0xf] }
  0x3b   :  { %404 = vmatpush.bf16.msrb.mxu3 %v1043_v10  ;;  %v1133_v58 = vor.u32 %v1327_v55, %v1130_v57  ;;  %v1105_v10 = vor.u32 %v1322_v8, %v1104_v7  ;;  %v1109_v12 = vor.u32 %v1321_v9, %v1106_v11  ;;  %v1319_v15 = vld [vmem:[#allocation10 + $0x14] sm:$0xf]  ;;  %v1088_v19 = vld [vmem:[#allocation10] sm:$0xf]  ;;  %v1317_v21 = vld [vmem:[#allocation10 + $0x4] sm:$0xf] }
  0x3c   :  { %v1335_v25 = vld [vmem:[#allocation10 + $0x94] sm:$0xf]  ;;  %v1162_v26 = vld [vmem:[#allocation10 + $0x98] sm:$0xf0]  ;;  %v1333_v32 = vld [vmem:[#allocation10 + $0x84] sm:$0xf] }
  0x3d   :  { %570 = vmatpush.bf16.msrb.mxu1 %v1129_v56  ;;  %v1165_v27 = vor.u32 %v1335_v25, %v1162_v26  ;;  %v263_v31 = vld [vmem:[%s1783_s4] sm:$0x3]  ;;  %v1154_v33 = vld [vmem:[#allocation10 + $0x88] sm:$0xf0]  ;;  %v1334_v37 = vld [vmem:[#allocation10 + $0x84] sm:$0xf0] }
  0x3e   :  { %379 = vmatpush.bf16.msra.mxu2 %v1015_v61  ;;  %v1325_v61 = vld [vmem:[#allocation10 + $0x44] sm:$0xf]  ;;  %v1157_v36 = vor.u32 %v1333_v32, %v1154_v33  ;;  %v266_v59 = vperm.slane %v263_v31, 1  ;;  %v1218_v8 = vld [vmem:[#allocation11 + $0x60] sm:$0xf] }
  0x3f   :  { %405 = vmatpush.bf16.msrb.mxu3 %v1035_v14  ;;  %v1125_v0 = vor.u32 %v1325_v61, %v1122_v63  ;;  %v1320_v14 = vld [vmem:[#allocation10 + $0x14] sm:$0xf0]  ;;  %v1350_v9 = vld [vmem:[#allocation11 + $0x64] sm:$0xf0]  ;;  %v1194_v26 = vld [vmem:[#allocation11 + $0x30] sm:$0xf] }
  0x40   :  { %v1097_v16 = vor.u32 %v1320_v14, %v1096_v13  ;;  %v1219_v11 = vor.u32 %v1350_v9, %v1218_v8  ;;  %v1210_v14 = vld [vmem:[#allocation11 + $0x50] sm:$0xf]  ;;  %v1186_v32 = vld [vmem:[#allocation11 + $0x20] sm:$0xf]  ;;  %v1342_v33 = vld [vmem:[#allocation11 + $0x24] sm:$0xf0] }
  0x41   :  { %571 = vmatpush.bf16.msrb.mxu1 %v1121_v62 }
  0x42   :  { %380 = vmatpush.bf16.msra.mxu2 %v1007_v6  ;;  %v1117_v6 = vor.u32 %v1323_v3, %v1114_v5 }
  0x43   :  { %406 = vmatpush.bf16.msrb.mxu3 %v1027_v17  ;;  %v1098_v17 = vld [vmem:[#allocation10 + $0x18] sm:$0xf0] }
  0x44   :  { %v1101_v18 = vor.u32 %v1319_v15, %v1098_v17  ;;  %v1348_v15 = vld [vmem:[#allocation11 + $0x54] sm:$0xf0] }
  0x45   :  { %572 = vmatpush.bf16.msrb.mxu1 %v1113_v4  ;;  %v1211_v17 = vor.u32 %v1348_v15, %v1210_v14 }
  0x46   :  { %596 = vmatpush.bf16.msrb.mxu2 %v1149_v35  ;;  %v265_v35 = vperm.slane %v263_v31, 0 }
  0x47   :  { %407 = vmatpush.bf16.msrb.mxu3 %v1019_v20  ;;  %v1318_v20 = vld [vmem:[#allocation10 + $0x4] sm:$0xf0] }
  0x48   :  { %v1089_v22 = vor.u32 %v1318_v20, %v1088_v19  ;;  %v1202_v20 = vld [vmem:[#allocation11 + $0x40] sm:$0xf] }
  0x49   :  { %573 = vmatpush.bf16.msrb.mxu1 %v1105_v10  ;;  %v1349_v10 = vld [vmem:[#allocation11 + $0x64] sm:$0xf] }
  0x4a   :  { %597 = vmatpush.bf16.msrb.mxu2 %v1141_v40 }
  0x4b   :  { %408 = vmatpush.bf16.msrb.mxu3 %v1011_v23  ;;  %v1090_v23 = vld [vmem:[#allocation10 + $0x8] sm:$0xf0] }
  0x4c   :  { %v1093_v24 = vor.u32 %v1317_v21, %v1090_v23  ;;  %v1346_v21 = vld [vmem:[#allocation11 + $0x44] sm:$0xf0] }
  0x4d   :  { %574 = vmatpush.bf16.msrb.mxu1 %v1097_v16  ;;  %v1347_v16 = vld [vmem:[#allocation11 + $0x54] sm:$0xf]  ;;  %v1203_v23 = vor.u32 %v1346_v21, %v1202_v20 }
  0x4e   :  { %598 = vmatpush.bf16.msrb.mxu2 %v1133_v58 }
  0x51   :  { %575 = vmatpush.bf16.msrb.mxu1 %v1089_v22  ;;  %v1345_v22 = vld [vmem:[#allocation11 + $0x44] sm:$0xf] }
  0x52   :  { %599 = vmatpush.bf16.msrb.mxu2 %v1125_v0 }
  0x56   :  { %600 = vmatpush.bf16.msrb.mxu2 %v1117_v6  ;;  %v1351_v6 = vld [vmem:[#allocation11 + $0x74] sm:$0xf] }
  0x5a   :  { %601 = vmatpush.bf16.msrb.mxu2 %v1109_v12  ;;  %v1220_v12 = vld [vmem:[#allocation11 + $0x68] sm:$0xf0] }
  0x5b   :  { %v1223_v13 = vor.u32 %v1349_v10, %v1220_v12 }
  0x5e   :  { %602 = vmatpush.bf16.msrb.mxu2 %v1101_v18  ;;  %v1212_v18 = vld [vmem:[#allocation11 + $0x58] sm:$0xf0] }
  0x5f   :  { %v1215_v19 = vor.u32 %v1347_v16, %v1212_v18 }
  0x62   :  { %603 = vmatpush.bf16.msrb.mxu2 %v1093_v24  ;;  %v1204_v24 = vld [vmem:[#allocation11 + $0x48] sm:$0xf0] }
  0x63   :  { %v1207_v25 = vor.u32 %v1345_v22, %v1204_v24  ;;  %v1363_v22 = vld [vmem:[#allocation13 + $0x30] sm:$0xff] }
  0xb1   :  { %v218_v28 = vpop.f32.mrf.mxu0  ;;  %v232_v29 = vpop.f32.mrf.mxu1 }
  0xb2   :  { %v1698_v41 = vadd.f32 %v218_v28, %v159_v34  ;;  %v1700_v42 = vadd.f32 %v232_v29, %v160_v39  ;;  %v1160_v28 = vld [vmem:[#allocation10 + $0x90] sm:$0xf]  ;;  %v1336_v29 = vld [vmem:[#allocation10 + $0x94] sm:$0xf0] }
  0xb3   :  { %v1161_v30 = vor.u32 %v1336_v29, %v1160_v28  ;;  %v1343_v28 = vld [vmem:[#allocation11 + $0x34] sm:$0xf] }
  0xb4   :  { %v237_v45 = vmax.f32 %v1698_v41, 0.0  ;;  %v238_v48 = vmax.f32 %v1700_v42, 0.0  ;;  %v1226_v42 = vld [vmem:[#allocation11 + $0x70] sm:$0xf] }
  0xb5   :  { %588 = vmatpush.bf16.msra.mxu0 %v1161_v30  ;;  %v1196_v30 = vld [vmem:[#allocation11 + $0x38] sm:$0xf0] }
  0xb6   :  { %v1199_v31 = vor.u32 %v1343_v28, %v1196_v30 }
  0xb9   :  { %v220_v43 = vpop.f32.mrf.mxu0  ;;  %v234_v44 = vpop.f32.mrf.mxu1 }
  0xba   :  { %v1703_v46 = vadd.f32 %v220_v43, %v159_v34  ;;  %v1705_v47 = vadd.f32 %v234_v44, %v160_v39  ;;  %v1152_v34 = vld [vmem:[#allocation10 + $0x80] sm:$0xf] }
  0xbb   :  { %v1153_v40 = vor.u32 %v1334_v37, %v1152_v34  ;;  %v1341_v34 = vld [vmem:[#allocation11 + $0x24] sm:$0xf] }
  0xbc   :  { %v239_v49 = vmax.f32 %v1703_v46, 0.0  ;;  %v240_v50 = vmax.f32 %v1705_v47, 0.0  ;;  %v1228_v47 = vld [vmem:[#allocation11 + $0x78] sm:$0xf0] }
  0xbd   :  { %589 = vmatpush.bf16.msra.mxu0 %v1153_v40  ;;  %v1339_v40 = vld [vmem:[#allocation11 + $0x14] sm:$0xf] }
  0xbe   :  { %v242_v51 = vpack.c.bf16 %v240_v50, %v238_v48  ;;  %v241_v52 = vpack.c.bf16 %v239_v49, %v237_v45 }
  0xc0   :  { %381 = vmatmul.bf16.vlgmr.msra.gmra.mxu2 %v241_v52  ;;  %1084 = vmatmul.msk.bf16.vlgmr.msra.gmra.mxu3 %vm369_vm2, %v242_v51 }
  0xc1   :  { %1085 = vmatmul.msk.bf16.vlgmr.msrb.gmra.mxu0 %vm369_vm2, %v242_v51  ;;  %616 = vmatpush.bf16.msra.mxu3 %v1165_v27  ;;  %v1344_v27 = vld [vmem:[#allocation11 + $0x34] sm:$0xf0] }
  0xc2   :  { %v1195_v29 = vor.u32 %v1344_v27, %v1194_v26 }
  0xc5   :  { %617 = vmatpush.bf16.msra.mxu3 %v1157_v36  ;;  %v1188_v36 = vld [vmem:[#allocation11 + $0x28] sm:$0xf0] }
  0xc6   :  { %v1191_v37 = vor.u32 %v1341_v34, %v1188_v36 }
  0xd0   :  { %409 = vmatmul.bf16.vlgmr.msrb.gmra.mxu3 %v241_v52 }
 0x13e   :  { %v424_v60 = vpop.f32.mrf.mxu0 }
 0x143   :  { %v382_v38 = vpop.f32.mrf.mxu2  ;;  %v396_v39 = vpop.f32.mrf.mxu3 }
 0x144   :  { %v383_v43 = vadd.f32 %v382_v38, %v265_v35  ;;  %v1178_v38 = vld [vmem:[#allocation11 + $0x10] sm:$0xf] }
 0x146   :  { %v397_v44 = vadd.f32 %v396_v39, %v383_v43  ;;  %v1340_v39 = vld [vmem:[#allocation11 + $0x14] sm:$0xf0] }
 0x147   :  { %v1179_v43 = vor.u32 %v1340_v39, %v1178_v38  ;;  %v1365_v38 = vld [vmem:[#allocation13 + $0x40] sm:$0xff] }
 0x148   :  { %v1725_v54 = vadd.f32 %v397_v44, %v237_v45  ;;  %v1180_v44 = vld [vmem:[#allocation11 + $0x18] sm:$0xf0] }
 0x14a   :  { %v433_v57 = vmax.f32 %v1725_v54, 0.0 }
 0x14b   :  { %v384_v51 = vpop.f32.mrf.mxu2  ;;  %v398_v52 = vpop.f32.mrf.mxu3 }
 0x14c   :  { %v385_v53 = vadd.f32 %v384_v51, %v265_v35  ;;  %v1187_v35 = vor.u32 %v1342_v33, %v1186_v32  ;;  %v1183_v51 = vor.u32 %v1339_v40, %v1180_v44 }
 0x14e   :  { %v399_v55 = vadd.f32 %v398_v52, %v385_v53  ;;  %v1242_v52 = vld [vmem:[#allocation11 + $0x90] sm:$0xf]  ;;  %v1356_v53 = vld [vmem:[#allocation11 + $0x94] sm:$0xf0] }
 0x150   :  { %v1729_v56 = vadd.f32 %v399_v55, %v239_v49  ;;  %v426_v49 = vpop.f32.mrf.mxu0  ;;  %v1243_v55 = vor.u32 %v1356_v53, %v1242_v52 }
 0x152   :  { %v435_v58 = vmax.f32 %v1729_v56, 0.0  ;;  %783 = vmatpush.bf16.msra.mxu1 %v1243_v55  ;;  %v1362_v56 = vld [vmem:[#allocation13 + $0x28] sm:$0xff] }
 0x153   :  { %v410_v61 = vpop.f32.mrf.mxu3 }
 0x154   :  { %v437_v62 = vpack.c.bf16 %v435_v58, %v433_v57  ;;  %v411_v41 = vadd.f32 %v410_v61, %v266_v59  ;;  %v1337_v61 = vld [vmem:[#allocation11 + $0x4] sm:$0xf] }
 0x156   :  { %576 = vmatmul.bf16.vlgmr.msrb.gmra.mxu1 %v437_v62  ;;  %604 = vmatmul.bf16.vlgmr.msrb.gmra.mxu2 %v437_v62  ;;  %v425_v45 = vadd.f32 %v424_v60, %v411_v41  ;;  %v1338_v60 = vld [vmem:[#allocation11 + $0x4] sm:$0xf0]  ;;  %v1172_v41 = vld [vmem:[#allocation11 + $0x8] sm:$0xf0] }
 0x158   :  { %v1739_v0 = vadd.f32 %v425_v45, %v238_v48  ;;  %v1352_v48 = vld [vmem:[#allocation11 + $0x74] sm:$0xf0]  ;;  %v1175_v45 = vor.u32 %v1337_v61, %v1172_v41 }
 0x159   :  { %v1227_v7 = vor.u32 %v1352_v48, %v1226_v42  ;;  %v1353_v42 = vld [vmem:[#allocation11 + $0x84] sm:$0xf] }
 0x15a   :  { %v434_v3 = vmax.f32 %v1739_v0, 0.0  ;;  %v1360_v0 = vld [vmem:[#allocation13 + $0x18] sm:$0xff] }
 0x15b   :  { %v412_v63 = vpop.f32.mrf.mxu3  ;;  %763 = vmatpush.bf16.msrb.mxu0 %v1227_v7 }
 0x15c   :  { %v413_v46 = vadd.f32 %v412_v63, %v266_v59  ;;  %v1170_v59 = vld [vmem:[#allocation11] sm:$0xf] }
 0x15d   :  { %v1171_v62 = vor.u32 %v1338_v60, %v1170_v59  ;;  %v1234_v63 = vld [vmem:[#allocation11 + $0x80] sm:$0xf] }
 0x15e   :  { %v427_v1 = vadd.f32 %v426_v49, %v413_v46  ;;  %v1354_v46 = vld [vmem:[#allocation11 + $0x84] sm:$0xf0] }
 0x15f   :  { %764 = vmatpush.bf16.msrb.mxu0 %v1219_v11  ;;  %v1235_v49 = vor.u32 %v1354_v46, %v1234_v63 }
 0x160   :  { %v1743_v2 = vadd.f32 %v427_v1, %v240_v50  ;;  %v1231_v50 = vor.u32 %v1351_v6, %v1228_v47  ;;  %v1355_v1 = vld [vmem:[#allocation11 + $0x94] sm:$0xf]  ;;  %v1236_v6 = vld [vmem:[#allocation11 + $0x88] sm:$0xf0] }
 0x161   :  { %784 = vmatpush.bf16.msra.mxu1 %v1235_v49  ;;  %v1239_v47 = vor.u32 %v1353_v42, %v1236_v6 }
 0x162   :  { %v436_v4 = vmax.f32 %v1743_v2, 0.0  ;;  %791 = vmatpush.bf16.msrb.mxu3 %v1231_v50  ;;  %v459_v50 = vld [vmem:[%s1785_s6] sm:$0x3]  ;;  %v1357_v2 = vld [vmem:[#allocation13] sm:$0xff] }
 0x163   :  { %765 = vmatpush.bf16.msrb.mxu0 %v1211_v17  ;;  %v461_v8 = vperm.slane %v459_v50, 0  ;;  %v1364_v17 = vld [vmem:[#allocation13 + $0x38] sm:$0xff] }
 0x164   :  { %v438_v5 = vpack.c.bf16 %v436_v4, %v434_v3  ;;  %916 = vmatpush.bf16.msra.mxu2 %v1364_v17 }
 0x166   :  { %1166 = vmatmul.msk.bf16.vlgmr.msra.gmra.mxu0 %vm369_vm2, %v438_v5  ;;  %1167 = vmatmul.msk.bf16.vlgmr.msra.gmra.mxu3 %vm369_vm2, %v438_v5  ;;  %v1244_v5 = vld [vmem:[#allocation11 + $0x98] sm:$0xf0] }
 0x167   :  { %792 = vmatpush.bf16.msrb.mxu3 %v1223_v13  ;;  %766 = vmatpush.bf16.msrb.mxu0 %v1203_v23  ;;  %v1247_v48 = vor.u32 %v1355_v1, %v1244_v5  ;;  %v462_v13 = vperm.slane %v459_v50, 1 }
 0x168   :  { %917 = vmatpush.bf16.msra.mxu2 %v1363_v22 }
 0x169   :  { %811 = vmatpush.bf16.msrb.mxu1 %v1247_v48 }
 0x16b   :  { %793 = vmatpush.bf16.msrb.mxu3 %v1215_v19  ;;  %767 = vmatpush.bf16.msrb.mxu0 %v1195_v29 }
 0x16c   :  { %918 = vmatpush.bf16.msra.mxu2 %v1362_v56 }
 0x16d   :  { %812 = vmatpush.bf16.msrb.mxu1 %v1239_v47 }
 0x16f   :  { %794 = vmatpush.bf16.msrb.mxu3 %v1207_v25  ;;  %768 = vmatpush.bf16.msrb.mxu0 %v1187_v35  ;;  %v1358_v35 = vld [vmem:[#allocation13 + $0x8] sm:$0xff] }
 0x173   :  { %795 = vmatpush.bf16.msrb.mxu3 %v1199_v31  ;;  %769 = vmatpush.bf16.msrb.mxu0 %v1179_v43 }
 0x177   :  { %796 = vmatpush.bf16.msrb.mxu3 %v1191_v37  ;;  %770 = vmatpush.bf16.msrb.mxu0 %v1171_v62  ;;  %v654_v37 = vld [vmem:[%s1787_s8] sm:$0x3] }
 0x178   :  { %v656_v39 = vperm.slane %v654_v37, 0 }
 0x17b   :  { %797 = vmatpush.bf16.msrb.mxu3 %v1183_v51 }
 0x17f   :  { %798 = vmatpush.bf16.msrb.mxu3 %v1175_v45  ;;  %v657_v45 = vperm.slane %v654_v37, 1 }
 0x1d3   :  { %v577_v7 = vpop.f32.mrf.mxu1 }
 0x1d4   :  { %v578_v11 = vadd.f32 %v577_v7, %v461_v8 }
 0x1d9   :  { %v605_v9 = vpop.f32.mrf.mxu2 }
 0x1da   :  { %v606_v19 = vadd.f32 %v605_v9, %v462_v13 }
 0x1db   :  { %v579_v12 = vpop.f32.mrf.mxu1 }
 0x1dc   :  { %v580_v16 = vadd.f32 %v579_v12, %v461_v8 }
 0x1e1   :  { %v607_v23 = vpop.f32.mrf.mxu2 }
 0x1e2   :  { %v608_v26 = vadd.f32 %v607_v23, %v462_v13 }
 0x1e3   :  { %v591_v10 = vpop.f32.mrf.mxu0 }
 0x1e4   :  { %v592_v14 = vadd.f32 %v591_v10, %v578_v11  ;;  %v1379_v11 = vld [vmem:[%s1789_s10] ss:$0 sm:$0xff]  ;;  %s1601_s10 = smov [#allocation14]  }
 0x1e5   :  { %s960_s16 = sshll.u32 %s1601_s10, 4  ;;  %s961_s16 = int_to_ptr.vmem [resolvable:$true] %s960_s16 }
 0x1e6   :  { %v624_v20 = vadd.f32 %v592_v14, %v433_v57 }
 0x1e8   :  { %v628_v27 = vmax.f32 %v624_v20, 0.0 }
 0x1e9   :  { %v619_v15 = vpop.f32.mrf.mxu3 }
 0x1ea   :  { %v620_v24 = vadd.f32 %v619_v15, %v606_v19 }
 0x1eb   :  { %v593_v18 = vpop.f32.mrf.mxu0 }
 0x1ec   :  { %v594_v21 = vadd.f32 %v593_v18, %v580_v16  ;;  %v625_v30 = vadd.f32 %v620_v24, %v434_v3  ;;  %v1359_v3 = vld [vmem:[#allocation13 + $0x10] sm:$0xff] }
 0x1ee   :  { %v626_v25 = vadd.f32 %v594_v21, %v435_v58  ;;  %v629_v57 = vmax.f32 %v625_v30, 0.0  ;;  %v1361_v58 = vld [vmem:[#allocation13 + $0x20] sm:$0xff] }
 0x1ef   :  { %919 = vmatpush.bf16.msra.mxu2 %v1361_v58 }
 0x1f0   :  { %v630_v28 = vmax.f32 %v626_v25, 0.0 }
 0x1f1   :  { %v621_v29 = vpop.f32.mrf.mxu3 }
 0x1f2   :  { %v632_v31 = vpack.c.bf16 %v630_v28, %v628_v27  ;;  %v622_v32 = vadd.f32 %v621_v29, %v608_v26 }
 0x1f3   :  { %920 = vmatpush.bf16.msra.mxu2 %v1360_v0 }
 0x1f4   :  { %v627_v54 = vadd.f32 %v622_v32, %v436_v4  ;;  %771 = vmatmul.bf16.vlgmr.msrb.gmra.mxu0 %v632_v31  ;;  %799 = vmatmul.bf16.vlgmr.msrb.gmra.mxu3 %v632_v31  ;;  %v1366_v4 = vld [vmem:[#allocation13 + $0x48] sm:$0xff] }
 0x1f5   :  { %936 = vmatpush.bf16.msra.mxu0 %v1366_v4 }
 0x1f6   :  { %v631_v33 = vmax.f32 %v627_v54, 0.0 }
 0x1f7   :  { %921 = vmatpush.bf16.msra.mxu2 %v1359_v3 }
 0x1f8   :  { %v633_v34 = vpack.c.bf16 %v631_v33, %v629_v57 }
 0x1f9   :  { %937 = vmatpush.bf16.msra.mxu0 %v1365_v38 }
 0x1fa   :  { %1248 = vmatmul.msk.bf16.vlgmr.msra.gmra.mxu1 %vm369_vm2, %v633_v34 }
 0x1fb   :  { %922 = vmatpush.bf16.msra.mxu2 %v1358_v35 }
 0x1ff   :  { %923 = vmatpush.bf16.msra.mxu2 %v1357_v2 }
 0x20a   :  { %1249 = vmatmul.msk.bf16.vlgmr.msrb.gmra.mxu1 %vm369_vm2, %v633_v34 }
 0x271   :  { %v772_v36 = vpop.f32.mrf.mxu0 }
 0x272   :  { %v773_v43 = vadd.f32 %v772_v36, %v656_v39 }
 0x277   :  { %v786_v40 = vpop.f32.mrf.mxu1  ;;  %v800_v60 = vpop.f32.mrf.mxu3 }
 0x278   :  { %v787_v51 = vadd.f32 %v786_v40, %v773_v43  ;;  %v801_v49 = vadd.f32 %v800_v60, %v657_v45 }
 0x279   :  { %v774_v44 = vpop.f32.mrf.mxu0 }
 0x27a   :  { %v775_v52 = vadd.f32 %v774_v44, %v656_v39  ;;  %v819_v55 = vadd.f32 %v787_v51, %v628_v27 }
 0x27c   :  { %v823_v62 = vmax.f32 %v819_v55, 0.0 }
 0x27f   :  { %v788_v53 = vpop.f32.mrf.mxu1  ;;  %v802_v1 = vpop.f32.mrf.mxu3 }
 0x280   :  { %v789_v59 = vadd.f32 %v788_v53, %v775_v52  ;;  %v803_v42 = vadd.f32 %v802_v1, %v657_v45 }
 0x282   :  { %v821_v61 = vadd.f32 %v789_v59, %v630_v28 }
 0x284   :  { %v825_v41 = vmax.f32 %v821_v61, 0.0 }
 0x286   :  { %v827_v63 = vpack.c.bf16 %v825_v41, %v823_v62 }
 0x287   :  { %v814_v46 = vpop.f32.mrf.mxu1 }
 0x288   :  { %924 = vmatmul.bf16.vlgmr.msra.gmra.mxu2 %v827_v63  ;;  %v815_v5 = vadd.f32 %v814_v46, %v801_v49 }
 0x28a   :  { %v820_v6 = vadd.f32 %v815_v5, %v629_v57 }
 0x28c   :  { %v824_v50 = vmax.f32 %v820_v6, 0.0 }
 0x28f   :  { %v816_v48 = vpop.f32.mrf.mxu1 }
 0x290   :  { %v817_v7 = vadd.f32 %v816_v48, %v803_v42 }
 0x292   :  { %v822_v47 = vadd.f32 %v817_v7, %v631_v33 }
 0x294   :  { %v826_v8 = vmax.f32 %v822_v47, 0.0 }
 0x296   :  { %v828_v9 = vpack.c.bf16 %v826_v8, %v824_v50 }
 0x298   :  { %1290 = vmatmul.msk.bf16.vlgmr.msra.gmra.mxu0 %vm369_vm2, %v828_v9 }
 0x30b   :  { %v925_v10 = vpop.f32.mrf.mxu2 }
 0x30c   :  { %v926_v12 = vadd.f32 %v1379_v11, %v925_v10 }
 0x313   :  { %v927_v16 = vpop.f32.mrf.mxu2 }
 0x314   :  { %v928_v18 = vadd.f32 %v1379_v11, %v927_v16 }
 0x315   :  { %v939_v13 = vpop.f32.mrf.mxu0 }
 0x316   :  { %v940_v14 = vadd.f32 %v939_v13, %v926_v12 }
 0x318   :  { %v944_v15 = vsub.f32 0.0, %v940_v14 }
 0x31a   :  { %v946_v17 = vmul.f32 1.442695, %v944_v15 }
 0x31c   :  { %1380 = vpow2.f32 %v946_v17 }
 0x31d   :  { %v941_v19 = vpop.f32.mrf.mxu0 }
 0x31e   :  { %v942_v20 = vadd.f32 %v941_v19, %v928_v18 }
 0x320   :  { %v945_v21 = vsub.f32 0.0, %v942_v20 }
 0x322   :  { %v1381_v22 = vpop.eup %1380  ;;  %v948_v23 = vmul.f32 1.442695, %v945_v21 }
 0x323   :  { %v950_v24 = vadd.f32 1.0, %v1381_v22 }
 0x324   :  { %1382 = vpow2.f32 %v948_v23 }
 0x325   :  { %1384 = vrcp.f32 %v950_v24 }
 0x32a   :  { %v1383_v25 = vpop.eup %1382 }
 0x32b   :  { %v1385_v26 = vpop.eup %1384  ;;  %v951_v27 = vadd.f32 1.0, %v1383_v25 }
 0x32c   :  { %954 = vst [vmem:[#allocation14] sm:$0xff] %v1385_v26 }
 0x32d   :  { %1386 = vrcp.f32 %v951_v27 }
 0x333   :  { %v1387_v28 = vpop.eup %1386 }
 0x334   :  { %955 = vst [vmem:[#allocation14 + $0x8] sm:$0xff] %v1387_v28 }
 0x335   :  { %968 = dma.vmem_to_hbm [thread:$0]  %s961_s16, 256, %s963_s18, [#allocation4], %s1591_s25, %s1591_s25, %s1592_s26  }
 0x336   :  { %1588 = dma.done.wait [#allocation4], 256  }
 0x337   :  { %1589 = vsyncadd [#allocation4], 4294967040 }
 0x338   :  { %973 = vsyncpa [#allocation3], 1 }
 0x339   :  { %974 = vsyncpa [#allocation6], 1 }
 0x33a   :  { %975 = vsyncpa [#allocation9], 1 }
 0x33b   :  { %976 = vsyncpa [#allocation12], 1 }
 0x33c   :  { %977 = vsyncpa [#allocation4], 1 }

</bundles_post_ra>
